<compile_context>
chip_gen: v6e
topology: v6e:2x2x1
jax: 0.10.0
libtpu: 0.0.40
codegen_flags: <defaults>
</compile_context>

<pallas_src>
import math

import jax
import jax.numpy as jnp
from jax.experimental import pallas as pl
from jax.experimental.pallas import tpu as pltpu

EPS = 1e-5
_INV_SQRT2 = 1.0 / math.sqrt(2.0)

_LANE = 128                       # TPU lane width
_TARGET_BLOCK_BYTES = 4 << 20     # ~4 MiB per block (4 bufs * 4 MiB < 32 MiB scoped VMEM)
_VMEM_LIMIT_BYTES = 32 << 20      # raise v5e's 16 MiB default; matches v6e/v7x default


def _se3_norm_nl_kernel(b_ref, x_ref, o_ref):
    """b_ref: (C,) f32 in SMEM; x_ref / o_ref: (1, M, C, TR, TL) VMEM blocks."""
    x = x_ref[...].astype(jnp.float32)
    # L2 norm over the irrep axis (leading axis -> cross-vreg VPU reduce, no XLU).
    sq = jnp.sum(x * x, axis=1)                       # (1, C, TR, TL)
    C = x_ref.shape[2]
    for c in range(C):                                # statically unrolled over channels
        mag = jnp.sqrt(sq[:, c]) + EPS                # (1, TR, TL)
        z = mag + b_ref[c]                            # scalar bias splat from SMEM
        # exact (erf-based) GELU, matching torch.nn.GELU() default
        gelu = 0.5 * z * (1.0 + jax.lax.erf(z * _INV_SQRT2))
        factor = gelu * pl.reciprocal(mag)            # exact reciprocal
        o_ref[:, :, c] = (x[:, :, c] * factor[:, None]).astype(o_ref.dtype)


def _plan(B, M, C, S, itemsize):
    """Choose a padding-free (rows, lane) view of the spatial volume and a block.

    Returns (view_shape, block_shape, index_map, grid).
    """
    sub = 8 * max(1, 4 // itemsize)                   # sublane packing (8 f32, 16 bf16)
    if S % _LANE == 0:
        rows, lane = S // _LANE, _LANE
        per_row = M * C * lane * itemsize
        max_rows = max(sub, (_TARGET_BLOCK_BYTES // per_row) // sub * sub)
        if rows <= max_rows:
            tile_r = rows                             # full extent -> always legal
        else:
            tile_r = max_rows                         # multiple of sublane packing
        n_s = -(-rows // tile_r)                      # cdiv; partial last block allowed
        block = (1, M, C, tile_r, lane)
        index_map = lambda b, s: (b, 0, 0, s, 0)
    else:
        # Ragged spatial: keep it as a single lane-major row and tile the lane axis.
        rows, lane = 1, S
        per_lane = M * C * sub * itemsize             # sublane dim pads to `sub`
        max_lane = max(_LANE, (_TARGET_BLOCK_BYTES // per_lane) // _LANE * _LANE)
        if lane <= max_lane:
            tile_l = lane                             # full extent -> always legal
        else:
            tile_l = max_lane                         # multiple of 128
        n_s = -(-lane // tile_l)
        block = (1, M, C, 1, tile_l)
        index_map = lambda b, s: (b, 0, 0, 0, s)
    return (B, M, C, rows, lane), block, index_map, (B, n_s)


@jax.jit
def _se3_norm_nl_part(part, bias):
    """Apply the norm nonlinearity to one degree: part (B, M, C, *spatial)."""
    B, M, C = part.shape[:3]
    spatial = part.shape[3:]
    S = int(math.prod(spatial)) if spatial else 1
    itemsize = jnp.dtype(part.dtype).itemsize

    view, block, index_map, grid = _plan(B, M, C, S, itemsize)

    x = part.reshape(view)                            # contiguous relabel, no HBM pass
    bias32 = bias.astype(jnp.float32)

    out = pl.pallas_call(
        _se3_norm_nl_kernel,
        out_shape=jax.ShapeDtypeStruct(view, part.dtype),
        grid_spec=pltpu.PrefetchScalarGridSpec(
            num_scalar_prefetch=0,
            grid=grid,
            in_specs=[
                pl.BlockSpec(memory_space=pltpu.MemorySpace.SMEM),   # bias (C,)
                pl.BlockSpec(block, index_map),
            ],
            out_specs=pl.BlockSpec(block, index_map),
        ),
        compiler_params=pltpu.CompilerParams(
            dimension_semantics=("parallel", "parallel"),
            vmem_limit_bytes=_VMEM_LIMIT_BYTES),
        # NOTE: no input_output_aliases — without caller-side donation the alias
        # forces XLA to insert a defensive copy (an extra HBM pass).
    )(bias32, x)

    return out.reshape(part.shape)


def se3_norm_nonlinearity(xs, biases):
    """Forward pass of SE3NormNonLinearity on a list of per-degree tensors."""
    return [_se3_norm_nl_part(p, b) for p, b in zip(xs, biases)]


def _reference(xs, biases):
    # pure-JAX reference mirroring the PyTorch forward
    outs = []
    for part, b in zip(xs, biases):
        mag = jnp.linalg.norm(part, axis=1, keepdims=True) + EPS
        bias = b.reshape(1, 1, -1, *([1] * (part.ndim - 3)))
        factor = jax.nn.gelu(mag + bias, approximate=False) / mag
        outs.append(part * factor)
    return outs


if __name__ == "__main__":
    key = jax.random.PRNGKey(0)

    # two degrees: l=0 (M=1) and l=1 (M=3), in_channels = [4, 4], spatial 16^3
    in_channels = [4, 4]
    B, D, H, W = 2, 16, 16, 16

    keys = jax.random.split(key, 2 * len(in_channels) + 2)
    xs, biases = [], []
    for l, c in enumerate(in_channels):
        M = 2 * l + 1
        xs.append(jax.random.normal(keys[2 * l], (B, M, c, D, H, W), dtype=jnp.float32))
        biases.append(jax.random.normal(keys[2 * l + 1], (c,), dtype=jnp.float32))

    outs = se3_norm_nonlinearity(xs, biases)
    outs = [jax.block_until_ready(o) for o in outs]

    refs = _reference(xs, biases)
    for o, r in zip(outs, refs):
        assert o.shape == r.shape and o.dtype == r.dtype
        assert jnp.allclose(o, r, atol=1e-5, rtol=1e-5), "mismatch vs reference"

    # also exercise the non-128-divisible spatial path (S = 6*10*10 = 600)
    x_odd = jax.random.normal(keys[-2], (B, 3, 3, 6, 10, 10), dtype=jnp.float32)
    b_odd = jax.random.normal(keys[-1], (3,), dtype=jnp.float32)
    (o_odd,) = se3_norm_nonlinearity([x_odd], [b_odd])
    o_odd = jax.block_until_ready(o_odd)
    (r_odd,) = _reference([x_odd], [b_odd])
    assert o_odd.shape == r_odd.shape
    assert jnp.allclose(o_odd, r_odd, atol=1e-5, rtol=1e-5), "mismatch (ragged spatial)"

    print("KERNEL_OK")
</pallas_src>

<mosaic_0001>
module attributes {stable_mosaic.version = 11 : i64} {
  func.func @_se3_norm_nl_kernel(%arg0: i32, %arg1: i32, %arg2: memref<4xf32, #tpu.memory_space<smem>>, %arg3: memref<1x1x4x32x128xf32, #tpu.memory_space<vmem>>, %arg4: memref<1x1x4x32x128xf32, #tpu.memory_space<vmem>>) attributes {dimension_semantics = [#tpu.dimension_semantics<parallel>, #tpu.dimension_semantics<parallel>], iteration_bounds = array<i64: 2, 1>, scalar_prefetch = 0 : i64, scratch_operands = 0 : i64, tpu.core_type = #tpu.core_type<tc>, window_params = [{transform_indices = @transform_0, window_bounds = array<i64: 4>}, {transform_indices = @transform_1, window_bounds = array<i64: 1, 1, 4, 32, 128>}, {transform_indices = @transform_2, window_bounds = array<i64: 1, 1, 4, 32, 128>}]} {
    %c0 = arith.constant 0 : index
    %c0_0 = arith.constant 0 : index
    %c0_1 = arith.constant 0 : index
    %c0_2 = arith.constant 0 : index
    %c0_3 = arith.constant 0 : index
    %0 = vector.load %arg3[%c0, %c0_0, %c0_1, %c0_2, %c0_3] : memref<1x1x4x32x128xf32, #tpu.memory_space<vmem>>, vector<1x1x4x32x128xf32>
    %1 = arith.mulf %0, %0 : vector<1x1x4x32x128xf32>
    %cst = arith.constant dense<0.000000e+00> : vector<1x4x32x128xf32>
    %2 = vector.multi_reduction <add>, %1, %cst [1] : vector<1x1x4x32x128xf32> to vector<1x4x32x128xf32>
    %3 = vector.extract_strided_slice %2 {offsets = [0, 0, 0, 0], sizes = [1, 1, 32, 128], strides = [1, 1, 1, 1]} : vector<1x4x32x128xf32> to vector<1x1x32x128xf32>
    %4 = vector.shape_cast %3 : vector<1x1x32x128xf32> to vector<1x32x128xf32>
    %5 = math.sqrt %4 : vector<1x32x128xf32>
    %cst_4 = arith.constant 9.99999974E-6 : f32
    %6 = vector.broadcast %cst_4 : f32 to vector<1x32x128xf32>
    %7 = arith.addf %5, %6 : vector<1x32x128xf32>
    %c0_5 = arith.constant 0 : index
    %8 = memref.load %arg2[%c0_5] : memref<4xf32, #tpu.memory_space<smem>>
    %9 = vector.broadcast %8 : f32 to vector<1x32x128xf32>
    %10 = arith.addf %7, %9 : vector<1x32x128xf32>
    %cst_6 = arith.constant 5.000000e-01 : f32
    %11 = vector.broadcast %cst_6 : f32 to vector<1x32x128xf32>
    %12 = arith.mulf %11, %10 : vector<1x32x128xf32>
    %cst_7 = arith.constant 0.707106769 : f32
    %13 = vector.broadcast %cst_7 : f32 to vector<1x32x128xf32>
    %14 = arith.mulf %10, %13 : vector<1x32x128xf32>
    %15 = math.erf %14 : vector<1x32x128xf32>
    %cst_8 = arith.constant 1.000000e+00 : f32
    %16 = vector.broadcast %cst_8 : f32 to vector<1x32x128xf32>
    %17 = arith.addf %16, %15 : vector<1x32x128xf32>
    %18 = arith.mulf %12, %17 : vector<1x32x128xf32>
    %19 = tpu.reciprocal %7 : vector<1x32x128xf32> -> vector<1x32x128xf32>
    %20 = arith.mulf %18, %19 : vector<1x32x128xf32>
    %21 = vector.extract_strided_slice %0 {offsets = [0, 0, 0, 0, 0], sizes = [1, 1, 1, 32, 128], strides = [1, 1, 1, 1, 1]} : vector<1x1x4x32x128xf32> to vector<1x1x1x32x128xf32>
    %22 = vector.shape_cast %21 : vector<1x1x1x32x128xf32> to vector<1x1x32x128xf32>
    %23 = vector.shape_cast %20 : vector<1x32x128xf32> to vector<1x1x32x128xf32>
    %24 = arith.mulf %22, %23 : vector<1x1x32x128xf32>
    %c0_9 = arith.constant 0 : index
    %c0_10 = arith.constant 0 : index
    %c0_11 = arith.constant 0 : index
    %c0_12 = arith.constant 0 : index
    %c0_13 = arith.constant 0 : index
    %25 = vector.load %arg4[%c0_9, %c0_10, %c0_11, %c0_12, %c0_13] : memref<1x1x4x32x128xf32, #tpu.memory_space<vmem>>, vector<1x1x1x32x128xf32>
    %26 = vector.shape_cast %25 : vector<1x1x1x32x128xf32> to vector<1x1x32x128xf32>
    %27 = vector.shape_cast %24 : vector<1x1x32x128xf32> to vector<1x1x1x32x128xf32>
    tpu.vector_store %arg4[%c0_9, %c0_10, %c0_11, %c0_12, %c0_13], %27 {strides = array<i32>} : memref<1x1x4x32x128xf32, #tpu.memory_space<vmem>>, vector<1x1x1x32x128xf32>,
    %28 = vector.extract_strided_slice %2 {offsets = [0, 1, 0, 0], sizes = [1, 1, 32, 128], strides = [1, 1, 1, 1]} : vector<1x4x32x128xf32> to vector<1x1x32x128xf32>
    %29 = vector.shape_cast %28 : vector<1x1x32x128xf32> to vector<1x32x128xf32>
    %30 = math.sqrt %29 : vector<1x32x128xf32>
    %cst_14 = arith.constant 9.99999974E-6 : f32
    %31 = vector.broadcast %cst_14 : f32 to vector<1x32x128xf32>
    %32 = arith.addf %30, %31 : vector<1x32x128xf32>
    %c1 = arith.constant 1 : index
    %33 = memref.load %arg2[%c1] : memref<4xf32, #tpu.memory_space<smem>>
    %34 = vector.broadcast %33 : f32 to vector<1x32x128xf32>
    %35 = arith.addf %32, %34 : vector<1x32x128xf32>
    %cst_15 = arith.constant 5.000000e-01 : f32
    %36 = vector.broadcast %cst_15 : f32 to vector<1x32x128xf32>
    %37 = arith.mulf %36, %35 : vector<1x32x128xf32>
    %cst_16 = arith.constant 0.707106769 : f32
    %38 = vector.broadcast %cst_16 : f32 to vector<1x32x128xf32>
    %39 = arith.mulf %35, %38 : vector<1x32x128xf32>
    %40 = math.erf %39 : vector<1x32x128xf32>
    %cst_17 = arith.constant 1.000000e+00 : f32
    %41 = vector.broadcast %cst_17 : f32 to vector<1x32x128xf32>
    %42 = arith.addf %41, %40 : vector<1x32x128xf32>
    %43 = arith.mulf %37, %42 : vector<1x32x128xf32>
    %44 = tpu.reciprocal %32 : vector<1x32x128xf32> -> vector<1x32x128xf32>
    %45 = arith.mulf %43, %44 : vector<1x32x128xf32>
    %46 = vector.extract_strided_slice %0 {offsets = [0, 0, 1, 0, 0], sizes = [1, 1, 1, 32, 128], strides = [1, 1, 1, 1, 1]} : vector<1x1x4x32x128xf32> to vector<1x1x1x32x128xf32>
    %47 = vector.shape_cast %46 : vector<1x1x1x32x128xf32> to vector<1x1x32x128xf32>
    %48 = vector.shape_cast %45 : vector<1x32x128xf32> to vector<1x1x32x128xf32>
    %49 = arith.mulf %47, %48 : vector<1x1x32x128xf32>
    %c0_18 = arith.constant 0 : index
    %c0_19 = arith.constant 0 : index
    %c1_20 = arith.constant 1 : index
    %c0_21 = arith.constant 0 : index
    %c0_22 = arith.constant 0 : index
    %50 = vector.load %arg4[%c0_18, %c0_19, %c1_20, %c0_21, %c0_22] : memref<1x1x4x32x128xf32, #tpu.memory_space<vmem>>, vector<1x1x1x32x128xf32>
    %51 = vector.shape_cast %50 : vector<1x1x1x32x128xf32> to vector<1x1x32x128xf32>
    %52 = vector.shape_cast %49 : vector<1x1x32x128xf32> to vector<1x1x1x32x128xf32>
    tpu.vector_store %arg4[%c0_18, %c0_19, %c1_20, %c0_21, %c0_22], %52 {strides = array<i32>} : memref<1x1x4x32x128xf32, #tpu.memory_space<vmem>>, vector<1x1x1x32x128xf32>,
    %53 = vector.extract_strided_slice %2 {offsets = [0, 2, 0, 0], sizes = [1, 1, 32, 128], strides = [1, 1, 1, 1]} : vector<1x4x32x128xf32> to vector<1x1x32x128xf32>
    %54 = vector.shape_cast %53 : vector<1x1x32x128xf32> to vector<1x32x128xf32>
    %55 = math.sqrt %54 : vector<1x32x128xf32>
    %cst_23 = arith.constant 9.99999974E-6 : f32
    %56 = vector.broadcast %cst_23 : f32 to vector<1x32x128xf32>
    %57 = arith.addf %55, %56 : vector<1x32x128xf32>
    %c2 = arith.constant 2 : index
    %58 = memref.load %arg2[%c2] : memref<4xf32, #tpu.memory_space<smem>>
    %59 = vector.broadcast %58 : f32 to vector<1x32x128xf32>
    %60 = arith.addf %57, %59 : vector<1x32x128xf32>
    %cst_24 = arith.constant 5.000000e-01 : f32
    %61 = vector.broadcast %cst_24 : f32 to vector<1x32x128xf32>
    %62 = arith.mulf %61, %60 : vector<1x32x128xf32>
    %cst_25 = arith.constant 0.707106769 : f32
    %63 = vector.broadcast %cst_25 : f32 to vector<1x32x128xf32>
    %64 = arith.mulf %60, %63 : vector<1x32x128xf32>
    %65 = math.erf %64 : vector<1x32x128xf32>
    %cst_26 = arith.constant 1.000000e+00 : f32
    %66 = vector.broadcast %cst_26 : f32 to vector<1x32x128xf32>
    %67 = arith.addf %66, %65 : vector<1x32x128xf32>
    %68 = arith.mulf %62, %67 : vector<1x32x128xf32>
    %69 = tpu.reciprocal %57 : vector<1x32x128xf32> -> vector<1x32x128xf32>
    %70 = arith.mulf %68, %69 : vector<1x32x128xf32>
    %71 = vector.extract_strided_slice %0 {offsets = [0, 0, 2, 0, 0], sizes = [1, 1, 1, 32, 128], strides = [1, 1, 1, 1, 1]} : vector<1x1x4x32x128xf32> to vector<1x1x1x32x128xf32>
    %72 = vector.shape_cast %71 : vector<1x1x1x32x128xf32> to vector<1x1x32x128xf32>
    %73 = vector.shape_cast %70 : vector<1x32x128xf32> to vector<1x1x32x128xf32>
    %74 = arith.mulf %72, %73 : vector<1x1x32x128xf32>
    %c0_27 = arith.constant 0 : index
    %c0_28 = arith.constant 0 : index
    %c2_29 = arith.constant 2 : index
    %c0_30 = arith.constant 0 : index
    %c0_31 = arith.constant 0 : index
    %75 = vector.load %arg4[%c0_27, %c0_28, %c2_29, %c0_30, %c0_31] : memref<1x1x4x32x128xf32, #tpu.memory_space<vmem>>, vector<1x1x1x32x128xf32>
    %76 = vector.shape_cast %75 : vector<1x1x1x32x128xf32> to vector<1x1x32x128xf32>
    %77 = vector.shape_cast %74 : vector<1x1x32x128xf32> to vector<1x1x1x32x128xf32>
    tpu.vector_store %arg4[%c0_27, %c0_28, %c2_29, %c0_30, %c0_31], %77 {strides = array<i32>} : memref<1x1x4x32x128xf32, #tpu.memory_space<vmem>>, vector<1x1x1x32x128xf32>,
    %78 = vector.extract_strided_slice %2 {offsets = [0, 3, 0, 0], sizes = [1, 1, 32, 128], strides = [1, 1, 1, 1]} : vector<1x4x32x128xf32> to vector<1x1x32x128xf32>
    %79 = vector.shape_cast %78 : vector<1x1x32x128xf32> to vector<1x32x128xf32>
    %80 = math.sqrt %79 : vector<1x32x128xf32>
    %cst_32 = arith.constant 9.99999974E-6 : f32
    %81 = vector.broadcast %cst_32 : f32 to vector<1x32x128xf32>
    %82 = arith.addf %80, %81 : vector<1x32x128xf32>
    %c3 = arith.constant 3 : index
    %83 = memref.load %arg2[%c3] : memref<4xf32, #tpu.memory_space<smem>>
    %84 = vector.broadcast %83 : f32 to vector<1x32x128xf32>
    %85 = arith.addf %82, %84 : vector<1x32x128xf32>
    %cst_33 = arith.constant 5.000000e-01 : f32
    %86 = vector.broadcast %cst_33 : f32 to vector<1x32x128xf32>
    %87 = arith.mulf %86, %85 : vector<1x32x128xf32>
    %cst_34 = arith.constant 0.707106769 : f32
    %88 = vector.broadcast %cst_34 : f32 to vector<1x32x128xf32>
    %89 = arith.mulf %85, %88 : vector<1x32x128xf32>
    %90 = math.erf %89 : vector<1x32x128xf32>
    %cst_35 = arith.constant 1.000000e+00 : f32
    %91 = vector.broadcast %cst_35 : f32 to vector<1x32x128xf32>
    %92 = arith.addf %91, %90 : vector<1x32x128xf32>
    %93 = arith.mulf %87, %92 : vector<1x32x128xf32>
    %94 = tpu.reciprocal %82 : vector<1x32x128xf32> -> vector<1x32x128xf32>
    %95 = arith.mulf %93, %94 : vector<1x32x128xf32>
    %96 = vector.extract_strided_slice %0 {offsets = [0, 0, 3, 0, 0], sizes = [1, 1, 1, 32, 128], strides = [1, 1, 1, 1, 1]} : vector<1x1x4x32x128xf32> to vector<1x1x1x32x128xf32>
    %97 = vector.shape_cast %96 : vector<1x1x1x32x128xf32> to vector<1x1x32x128xf32>
    %98 = vector.shape_cast %95 : vector<1x32x128xf32> to vector<1x1x32x128xf32>
    %99 = arith.mulf %97, %98 : vector<1x1x32x128xf32>
    %c0_36 = arith.constant 0 : index
    %c0_37 = arith.constant 0 : index
    %c3_38 = arith.constant 3 : index
    %c0_39 = arith.constant 0 : index
    %c0_40 = arith.constant 0 : index
    %100 = vector.load %arg4[%c0_36, %c0_37, %c3_38, %c0_39, %c0_40] : memref<1x1x4x32x128xf32, #tpu.memory_space<vmem>>, vector<1x1x1x32x128xf32>
    %101 = vector.shape_cast %100 : vector<1x1x1x32x128xf32> to vector<1x1x32x128xf32>
    %102 = vector.shape_cast %99 : vector<1x1x32x128xf32> to vector<1x1x1x32x128xf32>
    tpu.vector_store %arg4[%c0_36, %c0_37, %c3_38, %c0_39, %c0_40], %102 {strides = array<i32>} : memref<1x1x4x32x128xf32, #tpu.memory_space<vmem>>, vector<1x1x1x32x128xf32>,
    return
  }
  func.func @transform_0(%arg0: i32, %arg1: i32) -> i32 {
    %c0_i32 = arith.constant 0 : i32
    %c0_i32_0 = arith.constant 0 : i32
    return %c0_i32 : i32
  }
  func.func @transform_1(%arg0: i32, %arg1: i32) -> (i32, i32, i32, i32, i32) {
    %c0_i32 = arith.constant 0 : i32
    %c0_i32_0 = arith.constant 0 : i32
    %c0_i32_1 = arith.constant 0 : i32
    %c0_i32_2 = arith.constant 0 : i32
    return %arg0, %c0_i32, %c0_i32_0, %arg1, %c0_i32_1 : i32, i32, i32, i32, i32
  }
  func.func @transform_2(%arg0: i32, %arg1: i32) -> (i32, i32, i32, i32, i32) {
    %c0_i32 = arith.constant 0 : i32
    %c0_i32_0 = arith.constant 0 : i32
    %c0_i32_1 = arith.constant 0 : i32
    %c0_i32_2 = arith.constant 0 : i32
    return %arg0, %c0_i32, %c0_i32_0, %arg1, %c0_i32_1 : i32, i32, i32, i32, i32
  }
}

</mosaic_0001>

<bundles_post_ra>
// kernel: _se3_norm_nl_part.1
= control target key start
LH: loop header
LB: loop body
LE: loop exit
PB: predicated region body
PF: predicated region fallthrough
CT: control target
= control target key end

     0   :  { %7 = vsyncpa [#allocation3], 0  ;;  %s863_s9 = smov 0   ;;  %s865_s10 = smov 0   ;;  %s1310_s0 = inlined_call_operand.vmem [shape: f32[4], index: 0, kind: input, shape index: {}]   ;;  %s1311_s1 = inlined_call_operand.vmem [shape: f32[2,1,4,32,128], index: 1, kind: input, shape index: {}]   ;;  %s1312_s2 = inlined_call_operand.vmem [shape: f32[2,1,4,32,128], index: 2, kind: output, shape index: {}]  }
   0x1   :  { %s867_s11 = smov 0  }
   0x2 LB: > { %s643_s12 = sadd.s32 4294967295, %s845_s11   ;;  %s25_s13 = sadd.s32 1, %s841_s10  ;;  %s845_s11 = sphi %s867_s11, %s13_s11   ;;  %s841_s10 = sphi %s865_s10, %s1316_s10   ;;  %s837_s9 = sphi %s863_s9, %s1315_s9  }
   0x3   : > { %p27_p0 = scmp.ge.s32.totalorder %s25_s13, 2  ;;  %p645_p1 = scmp.ge.s32.totalorder %s845_s11, 1 }
   0x4   : > { %p107_p2 = scmp.lt.s32.totalorder %s845_s11, 3  ;;  %p888_p4 = scmp.eq.s32.totalorder %s643_s12, 0 }
   0x5   : > { %s1318_s13 = smov (%p27_p0, %s25_s13), 0  ;;  %s120_s18 = sshll.u32 %s1310_s0, 4  ;;  %s121_s18 = int_to_ptr.vmem [resolvable:$true] %s120_s18 }
   0x6   : > { %p884_p3 = pnand %p645_p1, %p107_p2  ;;  %s804_s19 = scalar_lea.vmem %s121_s18, 16 }
   0x7   : > { %p805_p7 = scmp.ne.s32.totalorder %s121_s18, %s804_s19  ;;  %p812_p11 = scmp.lt.s32.totalorder %s121_s18, %s121_s18 }
   0x8   : > { %p677_p5 = pneg %p884_p3  ;;  %p813_p12 = scmp.lt.s32.totalorder %s804_s19, %s804_s19 }
   0xa   : > { %p678_p6 = pnand %p888_p4, %p677_p5  ;;  %p814_p13 = por %p813_p12, %p812_p11 }
   0xc   : > { %p806_p8 = pneg %p678_p6 }
   0xe   : > { %p807_p9 = pnand %p806_p8, %p805_p7 }
  0x10   : > { %p808_p10 = pneg %p807_p9 }
  0x12   : > { %p815_p0 = pnand %p814_p13, %p808_p10 }
  0x14   : > { %818 = shalt.err (!%p815_p0)
}
  0x15   : > { %s847_s20 = smov [#allocation2]   ;;  %146 = sbr.rel (%p884_p3) target bundleno = 142 (0x8e), region = 28 }
  0x16   : > { %680 = dma.vmem_to_smem (!%p678_p6), %s121_s18, 16, %s847_s20, [#allocation3]  }
  0x1a   : > { %832 = dma.done.wait (%p888_p4), [#allocation3], 16  }
  0x1b   : > { %834 = vsyncadd (%p888_p4), [#allocation3], 4294967280 }
  0x1c   : > { %152 = sfence }
  0x1d   : > { %p178_p1 = scmp.lt.s32.totalorder %s837_s9, 1  ;;  %s277_s25 = sld [smem:[#allocation2]] }
  0x1e   : > { %s654_s26 = sld [smem:[#allocation2 + $0x1]] }
  0x1f   : > { %s1320_s9 = smov (!%p178_p1, %s837_s9), 1  ;;  %s973_s27 = sld [smem:[#allocation2 + $0x2]] }
  0x20   : > { %s671_s21 = sshll.u32 %s1320_s9, 7  ;;  %s1037_s28 = sld [smem:[#allocation2 + $0x3]] }
  0x21   : > { %s915_s24 = scalar_lea.vmem %s1311_s1, %s671_s21  ;;  %s1221_s3 = scalar_lea.vmem %s1312_s2, %s671_s21 }
  0x22   : > { %v918_v0 = vld [vmem:[%s915_s24] sm:$0xff]  ;;  %v921_v1 = vld [vmem:[%s915_s24 + $0x8] sm:$0xff]  ;;  %v924_v2 = vld [vmem:[%s915_s24 + $0x10] sm:$0xff] }
  0x23   : > { %v928_v3 = vmul.f32 %v918_v0, %v918_v0  ;;  %v932_v4 = vmul.f32 %v921_v1, %v921_v1  ;;  %v936_v5 = vmul.f32 %v924_v2, %v924_v2  ;;  %v939_v6 = vld [vmem:[%s915_s24 + $0x18] sm:$0xff]  ;;  %v942_v7 = vld [vmem:[%s915_s24 + $0x20] sm:$0xff]  ;;  %v949_v9 = vld [vmem:[%s915_s24 + $0x28] sm:$0xff]  ;;  %v988_v18 = vstv %s277_s25 }
  0x24   : > { %v946_v8 = vmul.f32 %v939_v6, %v939_v6  ;;  %v954_v10 = vmul.f32 %v942_v7, %v942_v7  ;;  %v960_v11 = vmul.f32 %v949_v9, %v949_v9  ;;  %v964_v12 = vld [vmem:[%s915_s24 + $0x30] sm:$0xff]  ;;  %v967_v13 = vld [vmem:[%s915_s24 + $0x38] sm:$0xff]  ;;  %v971_v14 = vld [vmem:[%s915_s24 + $0x40] sm:$0xff]  ;;  %v990_v19 = vstv %s654_s26 }
  0x25   : > { %708 = vrsqrt.f32 %v928_v3  ;;  %v978_v15 = vmul.f32 %v964_v12, %v964_v12  ;;  %v982_v16 = vmul.f32 %v967_v13, %v967_v13  ;;  %v985_v17 = vld [vmem:[%s915_s24 + $0x48] sm:$0xff]  ;;  %vm247_vm0 = vcmp.eq.f32.partialorder %v928_v3, inf  ;;  %v997_v21 = vld [vmem:[%s915_s24 + $0x50] sm:$0xff]  ;;  %v1004_v23 = vld [vmem:[%s915_s24 + $0x58] sm:$0xff] }
  0x26   : > { %710 = vrsqrt.f32 %v932_v4  ;;  %v994_v20 = vmul.f32 %v971_v14, %v971_v14  ;;  %vm249_vm1 = vcmp.eq.f32.partialorder %v928_v3, 0.0  ;;  %v250_v22 = vand.u32 2147483648, %v928_v3  ;;  %v1014_v26 = vld [vmem:[%s915_s24 + $0x60] sm:$0xff]  ;;  %v1051_v41 = vld [vmem:[%s915_s24 + $0x68] sm:$0xff] }
  0x27   : > { %712 = vrsqrt.f32 %v936_v5  ;;  %vm254_vm2 = vcmp.eq.f32.partialorder %v932_v4, inf  ;;  %vm256_vm3 = vcmp.eq.f32.partialorder %v932_v4, 0.0  ;;  %v257_v24 = vand.u32 2147483648, %v932_v4 }
  0x28   : > { %714 = vrsqrt.f32 %v946_v8  ;;  %vm261_vm4 = vcmp.eq.f32.partialorder %v936_v5, inf  ;;  %v1011_v25 = vmul.f32 %v985_v17, %v985_v17  ;;  %vm263_vm5 = vcmp.eq.f32.partialorder %v936_v5, 0.0 }
  0x29   : > { %716 = vrsqrt.f32 %v954_v10  ;;  %v264_v27 = vand.u32 2147483648, %v936_v5  ;;  %v1021_v28 = vmul.f32 %v997_v21, %v997_v21  ;;  %vm268_vm6 = vcmp.eq.f32.partialorder %v946_v8, inf }
  0x2a   : > { %718 = vrsqrt.f32 %v960_v11  ;;  %vm270_vm7 = vcmp.eq.f32.partialorder %v946_v8, 0.0  ;;  %v1028_v29 = vmul.f32 %v1004_v23, %v1004_v23  ;;  %v271_v30 = vand.u32 2147483648, %v946_v8 }
  0x2b   : > { %720 = vrsqrt.f32 %v978_v15  ;;  %vm321_vm8 = vcmp.eq.f32.partialorder %v954_v10, inf  ;;  %v324_v31 = vand.u32 2147483648, %v954_v10  ;;  %v1035_v32 = vmul.f32 %v1014_v26, %v1014_v26 }
  0x2c   : > { %722 = vrsqrt.f32 %v982_v16  ;;  %vm323_vm9 = vcmp.eq.f32.partialorder %v954_v10, 0.0  ;;  %v331_v34 = vand.u32 2147483648, %v960_v11  ;;  %v338_v35 = vand.u32 2147483648, %v978_v15 }
  0x2d   : > { %724 = vrsqrt.f32 %v994_v20  ;;  %v1043_v36 = vstv %s973_s27  ;;  %v345_v39 = vand.u32 2147483648, %v982_v16  ;;  %v399_v40 = vand.u32 2147483648, %v994_v20 }
  0x2e   : > { %726 = vrsqrt.f32 %v1011_v25  ;;  %vm328_vm10 = vcmp.eq.f32.partialorder %v960_v11, inf  ;;  %v406_v44 = vand.u32 2147483648, %v1011_v25  ;;  %v413_v45 = vand.u32 2147483648, %v1021_v28 }
  0x2f   : > { %728 = vrsqrt.f32 %v1021_v28  ;;  %vm330_vm11 = vcmp.eq.f32.partialorder %v960_v11, 0.0  ;;  %v420_v49 = vand.u32 2147483648, %v1028_v29  ;;  %vm335_vm12 = vcmp.eq.f32.partialorder %v978_v15, inf }
  0x30   : > { %730 = vrsqrt.f32 %v1028_v29  ;;  %vm342_vm13 = vcmp.eq.f32.partialorder %v982_v16, inf  ;;  %v1075_v54 = vmul.f32 %v1051_v41, %v1051_v41  ;;  %vm337_vm14 = vcmp.eq.f32.partialorder %v978_v15, 0.0 }
  0x31   : > { %732 = vrsqrt.f32 %v1035_v32  ;;  %vm344_vm15 = vcmp.eq.f32.partialorder %v982_v16, 0.0  ;;  %v474_v63 = vand.u32 2147483648, %v1035_v32 }
  0x32   : > { %v709_v33 = vpop.eup %708  ;;  %734 = vrsqrt.f32 %v1075_v54 }
  0x33   : > { %v711_v37 = vpop.eup %710  ;;  %v246_v38 = vmul.f32 %v709_v33, %v928_v3  ;;  %v1099_v33 = vld [vmem:[%s915_s24 + $0x70] sm:$0xff] }
  0x34   : > { %v713_v42 = vpop.eup %712  ;;  %v253_v43 = vmul.f32 %v711_v37, %v932_v4 }
  0x35   : > { %v715_v46 = vpop.eup %714  ;;  %v248_v47 = vsel %vm247_vm0, %v928_v3, %v246_v38  ;;  %v260_v48 = vmul.f32 %v713_v42, %v936_v5  ;;  %vm396_vm0 = vcmp.eq.f32.partialorder %v994_v20, inf  ;;  %v1107_v38 = vld [vmem:[%s915_s24 + $0x78] sm:$0xff] }
  0x36   : > { %v717_v50 = vpop.eup %716  ;;  %v251_v51 = vsel %vm249_vm1, %v250_v22, %v248_v47  ;;  %v255_v52 = vsel %vm254_vm2, %v932_v4, %v253_v43  ;;  %v267_v53 = vmul.f32 %v715_v46, %v946_v8  ;;  %vm398_vm1 = vcmp.eq.f32.partialorder %v994_v20, 0.0 }
  0x37   : > { %v273_v55 = vadd.f32 1e-05, %v251_v51  ;;  %v258_v56 = vsel %vm256_vm3, %v257_v24, %v255_v52  ;;  %v262_v57 = vsel %vm261_vm4, %v936_v5, %v260_v48  ;;  %v320_v58 = vmul.f32 %v717_v50, %v954_v10  ;;  %v719_v59 = vpop.eup %718 }
  0x38   : > { %v274_v60 = vadd.f32 1e-05, %v258_v56  ;;  %v265_v61 = vsel %vm263_vm5, %v264_v27, %v262_v57  ;;  %v269_v62 = vsel %vm268_vm6, %v946_v8, %v267_v53  ;;  %v1096_v24 = vstv %s1037_s28  ;;  %v721_v42 = vpop.eup %720 }
  0x39   : > { %v279_v3 = vadd.f32 %v988_v18, %v273_v55  ;;  %v275_v4 = vadd.f32 1e-05, %v265_v61  ;;  %v272_v22 = vsel %vm270_vm7, %v271_v30, %v269_v62  ;;  %v322_v37 = vsel %vm321_vm8, %v954_v10, %v320_v58  ;;  %v723_v46 = vpop.eup %722 }
  0x3a   : > { %v280_v5 = vadd.f32 %v988_v18, %v274_v60  ;;  %v276_v27 = vadd.f32 1e-05, %v272_v22  ;;  %736 = vrcp.f32 %v273_v55  ;;  %v327_v43 = vmul.f32 %v719_v59, %v960_v11  ;;  %v725_v51 = vpop.eup %724 }
  0x3b   : > { %v287_v8 = vmul.f32 0.70710677, %v279_v3  ;;  %v281_v30 = vadd.f32 %v988_v18, %v275_v4  ;;  %vm403_vm2 = vcmp.eq.f32.partialorder %v1011_v25, inf  ;;  %738 = vrcp.f32 %v274_v60  ;;  %v727_v58 = vpop.eup %726 }
  0x3c   : > { %v288_v47 = vmul.f32 0.70710677, %v280_v5  ;;  %v282_v48 = vadd.f32 %v988_v18, %v276_v27  ;;  %v1116_v50 = vmul.f32 %v1099_v33, %v1099_v33  ;;  %v325_v53 = vsel %vm323_vm9, %v324_v31, %v322_v37  ;;  %v729_v60 = vpop.eup %728 }
  0x3d   : > { %740 = verf.f32 %v287_v8  ;;  %v289_v52 = vmul.f32 0.70710677, %v281_v30  ;;  %vm405_vm3 = vcmp.eq.f32.partialorder %v1011_v25, 0.0  ;;  %vm410_vm4 = vcmp.eq.f32.partialorder %v1021_v28, inf  ;;  %v731_v22 = vpop.eup %730 }
  0x3e   : > { %v1126_v55 = vmul.f32 %v1107_v38, %v1107_v38  ;;  %v1128_v18 = vmul.f32 0.5, %v279_v3  ;;  %742 = verf.f32 %v288_v47  ;;  %v290_v56 = vmul.f32 0.70710677, %v282_v48 }
  0x3f   : > { %v347_v57 = vadd.f32 1e-05, %v325_v53  ;;  %vm412_vm5 = vcmp.eq.f32.partialorder %v1021_v28, 0.0  ;;  %744 = verf.f32 %v289_v52  ;;  %v329_v10 = vsel %vm328_vm10, %v960_v11, %v327_v43  ;;  %v1148_v43 = vpop.eup %732 }
  0x40   : > { %v334_v31 = vmul.f32 %v721_v42, %v978_v15  ;;  %v341_v59 = vmul.f32 %v723_v46, %v982_v16  ;;  %746 = verf.f32 %v290_v56  ;;  %v332_v62 = vsel %vm330_vm11, %v331_v34, %v329_v10 }
  0x41   : > { %v353_v61 = vadd.f32 %v990_v19, %v347_v57  ;;  %v395_v3 = vmul.f32 %v725_v51, %v994_v20  ;;  %748 = vrcp.f32 %v275_v4  ;;  %v348_v37 = vadd.f32 1e-05, %v332_v62 }
  0x42   : > { %v336_v42 = vsel %vm335_vm12, %v978_v15, %v334_v31  ;;  %v343_v8 = vsel %vm342_vm13, %v982_v16, %v341_v59  ;;  %750 = vrcp.f32 %v276_v27  ;;  %vm417_vm6 = vcmp.eq.f32.partialorder %v1028_v29, inf }
  0x43   : > { %v361_v46 = vmul.f32 0.70710677, %v353_v61  ;;  %v339_v11 = vsel %vm337_vm14, %v338_v35, %v336_v42  ;;  %v346_v34 = vsel %vm344_vm15, %v345_v39, %v343_v8  ;;  %v284_v4 = vmul.f32 0.5, %v280_v5 }
  0x44   : > { %v354_v47 = vadd.f32 %v990_v19, %v348_v37  ;;  %v349_v51 = vadd.f32 1e-05, %v339_v11  ;;  %v350_v52 = vadd.f32 1e-05, %v346_v34  ;;  %v397_v27 = vsel %vm396_vm0, %v994_v20, %v395_v3 }
  0x45   : > { %752 = verf.f32 %v361_v46  ;;  %v402_v15 = vmul.f32 %v727_v58, %v1011_v25  ;;  %v409_v35 = vmul.f32 %v729_v60, %v1021_v28  ;;  %v285_v53 = vmul.f32 0.5, %v281_v30  ;;  %v1177_v30 = vpop.eup %734 }
  0x46   : > { %754 = vrcp.f32 %v347_v57  ;;  %v362_v16 = vmul.f32 0.70710677, %v354_v47  ;;  %v355_v39 = vadd.f32 %v990_v19, %v349_v51  ;;  %vm419_vm7 = vcmp.eq.f32.partialorder %v1028_v29, 0.0 }
  0x47   : > { %756 = vrcp.f32 %v348_v37  ;;  %v1168_v5 = vadd.f32 %v990_v19, %v350_v52  ;;  %v400_v56 = vsel %vm398_vm1, %v399_v40, %v397_v27  ;;  %v404_v58 = vsel %vm403_vm2, %v1011_v25, %v402_v15  ;;  %v737_v59 = vpop.eup %736 }
  0x48   : > { %v286_v57 = vmul.f32 0.5, %v282_v48  ;;  %758 = verf.f32 %v362_v16  ;;  %v363_v10 = vmul.f32 0.70710677, %v355_v39  ;;  %v422_v31 = vadd.f32 1e-05, %v400_v56  ;;  %v739_v60 = vpop.eup %738 }
  0x49   : > { %760 = vrcp.f32 %v349_v51  ;;  %v364_v19 = vmul.f32 0.70710677, %v1168_v5  ;;  %v407_v20 = vsel %vm405_vm3, %v406_v44, %v404_v58  ;;  %v411_v40 = vsel %vm410_vm4, %v1021_v28, %v409_v35 }
  0x4a   : > { %vm471_vm8 = vcmp.eq.f32.partialorder %v1035_v32, inf  ;;  %762 = verf.f32 %v363_v10  ;;  %v1189_v48 = vadd.f32 %v1043_v36, %v422_v31  ;;  %v423_v62 = vadd.f32 1e-05, %v407_v20  ;;  %v741_v25 = vpop.eup %740 }
  0x4b   : > { %v414_v3 = vsel %vm412_vm5, %v413_v45, %v411_v40  ;;  %vm473_vm9 = vcmp.eq.f32.partialorder %v1035_v32, 0.0  ;;  %v357_v44 = vmul.f32 0.5, %v353_v61  ;;  %764 = verf.f32 %v364_v19  ;;  %v743_v8 = vpop.eup %742 }
  0x4c   : > { %v424_v37 = vadd.f32 1e-05, %v414_v3  ;;  %v416_v42 = vmul.f32 %v731_v22, %v1028_v29  ;;  %v295_v46 = vadd.f32 1.0, %v741_v25  ;;  %v1197_v11 = vmul.f32 0.5, %v354_v47  ;;  %v745_v51 = vpop.eup %744 }
  0x4d   : > { %766 = vrcp.f32 %v350_v52  ;;  %v436_v34 = vmul.f32 0.70710677, %v1189_v48  ;;  %v296_v27 = vadd.f32 1.0, %v743_v8  ;;  %v1200_v15 = vmul.f32 0.5, %v355_v39  ;;  %v747_v61 = vpop.eup %746 }
  0x4e   : > { %v1203_v28 = vadd.f32 %v1043_v36, %v423_v62  ;;  %v1206_v45 = vadd.f32 %v1043_v36, %v424_v37  ;;  %v299_v22 = vmul.f32 %v295_v46, %v1128_v18  ;;  %v297_v35 = vadd.f32 1.0, %v745_v51  ;;  %v749_v52 = vpop.eup %748 }
  0x4f   : > { %768 = verf.f32 %v436_v34  ;;  %v418_v47 = vsel %vm417_vm6, %v1028_v29, %v416_v42  ;;  %v300_v16 = vmul.f32 %v296_v27, %v284_v4  ;;  %v298_v39 = vadd.f32 1.0, %v747_v61  ;;  %v751_v10 = vpop.eup %750 }
  0x50   : > { %v437_v56 = vmul.f32 0.70710677, %v1203_v28  ;;  %v470_v58 = vmul.f32 %v1148_v43, %v1035_v32  ;;  %v307_v19 = vmul.f32 %v737_v59, %v299_v22  ;;  %v301_v20 = vmul.f32 %v297_v35, %v285_v53 }
  0x51   : > { %770 = vrcp.f32 %v422_v31  ;;  %v438_v18 = vmul.f32 0.70710677, %v1206_v45  ;;  %v308_v4 = vmul.f32 %v739_v60, %v300_v16  ;;  %v302_v40 = vmul.f32 %v298_v39, %v286_v57 }
  0x52   : > { %772 = verf.f32 %v437_v56  ;;  %v421_v43 = vsel %vm419_vm7, %v420_v49, %v418_v47  ;;  %v753_v59 = vpop.eup %752  ;;  %v311_v53 = vmul.f32 %v307_v19, %v918_v0  ;;  %v309_v31 = vmul.f32 %v749_v52, %v301_v20 }
  0x53   : > { %774 = verf.f32 %v438_v18  ;;  %v425_v3 = vadd.f32 1e-05, %v421_v43  ;;  %v755_v25 = vpop.eup %754  ;;  %v312_v42 = vmul.f32 %v308_v4, %v921_v1  ;;  %v310_v8 = vmul.f32 %v751_v10, %v302_v40 }
  0x54   : > { %v369_v60 = vadd.f32 1.0, %v753_v59  ;;  %776 = vrcp.f32 %v423_v62  ;;  %v757_v57 = vpop.eup %756  ;;  %315 = vst [vmem:[%s1221_s3] sm:$0xff] %v311_v53  ;;  %v313_v46 = vmul.f32 %v309_v31, %v924_v2  ;;  %v472_v0 = vsel %vm471_vm8, %v1035_v32, %v470_v58 }
  0x55   : > { %778 = vrcp.f32 %v424_v37  ;;  %v1232_v29 = vadd.f32 %v1043_v36, %v425_v3  ;;  %v759_v49 = vpop.eup %758  ;;  %316 = vst [vmem:[%s1221_s3 + $0x8] sm:$0xff] %v312_v42  ;;  %v314_v1 = vmul.f32 %v310_v8, %v939_v6  ;;  %v475_v62 = vsel %vm473_vm9, %v474_v63, %v472_v0 }
  0x56   : > { %v373_v34 = vmul.f32 %v369_v60, %v357_v44  ;;  %v477_v2 = vmul.f32 %v1177_v30, %v1075_v54  ;;  %v761_v37 = vpop.eup %760  ;;  %317 = vst [vmem:[%s1221_s3 + $0x10] sm:$0xff] %v313_v46  ;;  %v370_v36 = vadd.f32 1.0, %v759_v49  ;;  %v360_v51 = vmul.f32 0.5, %v1168_v5 }
  0x57   : > { %v439_v27 = vmul.f32 0.70710677, %v1232_v29  ;;  %v497_v61 = vadd.f32 1e-05, %v475_v62  ;;  %v763_v22 = vpop.eup %762  ;;  %318 = vst [vmem:[%s1221_s3 + $0x18] sm:$0xff] %v314_v1  ;;  %vm478_vm10 = vcmp.eq.f32.partialorder %v1075_v54, inf }
  0x58   : > { %v381_v6 = vmul.f32 %v755_v25, %v373_v34  ;;  %vm480_vm11 = vcmp.eq.f32.partialorder %v1075_v54, 0.0  ;;  %v481_v32 = vand.u32 2147483648, %v1075_v54  ;;  %v765_v63 = vpop.eup %764  ;;  %v374_v30 = vmul.f32 %v370_v36, %v1197_v11 }
  0x59   : > { %v371_v44 = vadd.f32 1.0, %v763_v22  ;;  %780 = verf.f32 %v439_v27  ;;  %v503_v5 = vadd.f32 %v1096_v24, %v497_v61  ;;  %v372_v52 = vadd.f32 1.0, %v765_v63 }
  0x5a   : > { %v767_v35 = vpop.eup %766  ;;  %v385_v47 = vmul.f32 %v381_v6, %v942_v7  ;;  %v432_v16 = vmul.f32 0.5, %v1189_v48  ;;  %v479_v39 = vsel %vm478_vm10, %v1075_v54, %v477_v2  ;;  %v382_v56 = vmul.f32 %v757_v57, %v374_v30 }
  0x5b   : > { %v375_v58 = vmul.f32 %v371_v44, %v1200_v15  ;;  %782 = vrcp.f32 %v425_v3  ;;  %v511_v10 = vmul.f32 0.70710677, %v503_v5  ;;  %v376_v11 = vmul.f32 %v372_v52, %v360_v51 }
  0x5c   : > { %v769_v19 = vpop.eup %768  ;;  %655 = vst [vmem:[%s1221_s3 + $0x20] sm:$0xff] %v385_v47  ;;  %v482_v20 = vsel %vm480_vm11, %v481_v32, %v479_v39  ;;  %784 = vrsqrt.f32 %v1116_v50  ;;  %v386_v7 = vmul.f32 %v382_v56, %v949_v9  ;;  %v433_v15 = vmul.f32 0.5, %v1203_v28 }
  0x5d   : > { %v383_v18 = vmul.f32 %v761_v37, %v375_v58  ;;  %v444_v48 = vadd.f32 1.0, %v769_v19  ;;  %786 = verf.f32 %v511_v10  ;;  %v384_v40 = vmul.f32 %v767_v35, %v376_v11 }
  0x5e   : > { %v771_v4 = vpop.eup %770  ;;  %788 = vrcp.f32 %v497_v61  ;;  %v498_v43 = vadd.f32 1e-05, %v482_v20  ;;  %656 = vst [vmem:[%s1221_s3 + $0x28] sm:$0xff] %v386_v7  ;;  %v434_v31 = vmul.f32 0.5, %v1206_v45  ;;  %v435_v1 = vmul.f32 0.5, %v1232_v29 }
  0x5f   : > { %v773_v59 = vpop.eup %772  ;;  %v387_v54 = vmul.f32 %v383_v18, %v964_v12  ;;  %v448_v53 = vmul.f32 %v444_v48, %v432_v16  ;;  %790 = vrsqrt.f32 %v1126_v55  ;;  %v388_v3 = vmul.f32 %v384_v40, %v967_v13 }
  0x60   : > { %v775_v9 = vpop.eup %774  ;;  %v445_v25 = vadd.f32 1.0, %v773_v59  ;;  %v504_v42 = vadd.f32 %v1096_v24, %v498_v43  ;;  %vm485_vm12 = vcmp.eq.f32.partialorder %v1116_v50, inf  ;;  %v488_v61 = vand.u32 2147483648, %v1116_v50 }
  0x61   : > { %v777_v28 = vpop.eup %776  ;;  %657 = vst [vmem:[%s1221_s3 + $0x30] sm:$0xff] %v387_v54  ;;  %v456_v8 = vmul.f32 %v771_v4, %v448_v53  ;;  %v446_v60 = vadd.f32 1.0, %v775_v9  ;;  %658 = vst [vmem:[%s1221_s3 + $0x38] sm:$0xff] %v388_v3  ;;  %vm487_vm13 = vcmp.eq.f32.partialorder %v1116_v50, 0.0  ;;  %vm492_vm14 = vcmp.eq.f32.partialorder %v1126_v55, inf }
  0x62   : > { %v779_v57 = vpop.eup %778  ;;  %v449_v12 = vmul.f32 %v445_v25, %v433_v15  ;;  %v512_v46 = vmul.f32 0.70710677, %v504_v42  ;;  %vm494_vm15 = vcmp.eq.f32.partialorder %v1126_v55, 0.0  ;;  %v495_v30 = vand.u32 2147483648, %v1126_v55 }
  0x63   : > { %v460_v45 = vmul.f32 %v456_v8, %v971_v14  ;;  %v450_v0 = vmul.f32 %v446_v60, %v434_v31  ;;  %v507_v14 = vmul.f32 0.5, %v503_v5  ;;  %v508_v56 = vmul.f32 0.5, %v504_v42 }
  0x64   : > { %v457_v49 = vmul.f32 %v777_v28, %v449_v12  ;;  %792 = verf.f32 %v512_v46 }
  0x65   : > { %660 = vst [vmem:[%s1221_s3 + $0x40] sm:$0xff] %v460_v45  ;;  %v458_v13 = vmul.f32 %v779_v57, %v450_v0  ;;  %794 = vrcp.f32 %v498_v43 }
  0x66   : > { %v781_v34 = vpop.eup %780  ;;  %v461_v62 = vmul.f32 %v457_v49, %v985_v17 }
  0x67   : > { %v462_v2 = vmul.f32 %v458_v13, %v997_v21  ;;  %v447_v37 = vadd.f32 1.0, %v781_v34 }
  0x68   : > { %v783_v36 = vpop.eup %782  ;;  %661 = vst [vmem:[%s1221_s3 + $0x48] sm:$0xff] %v461_v62 }
  0x69   : > { %v785_v51 = vpop.eup %784  ;;  %662 = vst [vmem:[%s1221_s3 + $0x50] sm:$0xff] %v462_v2  ;;  %v451_v27 = vmul.f32 %v447_v37, %v435_v1 }
  0x6a   : > { %v787_v22 = vpop.eup %786  ;;  %v484_v29 = vmul.f32 %v785_v51, %v1116_v50 }
  0x6b   : > { %v789_v17 = vpop.eup %788  ;;  %v459_v6 = vmul.f32 %v783_v36, %v451_v27  ;;  %v519_v21 = vadd.f32 1.0, %v787_v22 }
  0x6c   : > { %v791_v32 = vpop.eup %790  ;;  %v486_v63 = vsel %vm485_vm12, %v1116_v50, %v484_v29 }
  0x6d   : > { %v463_v44 = vmul.f32 %v459_v6, %v1004_v23  ;;  %v523_v5 = vmul.f32 %v519_v21, %v507_v14  ;;  %v489_v35 = vsel %vm487_vm13, %v488_v61, %v486_v63  ;;  %v491_v47 = vmul.f32 %v791_v32, %v1126_v55 }
  0x6e   : > { %v499_v52 = vadd.f32 1e-05, %v489_v35 }
  0x6f   : > { %663 = vst [vmem:[%s1221_s3 + $0x58] sm:$0xff] %v463_v44  ;;  %v531_v16 = vmul.f32 %v789_v17, %v523_v5  ;;  %v493_v39 = vsel %vm492_vm14, %v1126_v55, %v491_v47 }
  0x70   : > { %v505_v50 = vadd.f32 %v1096_v24, %v499_v52  ;;  %v496_v58 = vsel %vm494_vm15, %v495_v30, %v493_v39 }
  0x71   : > { %v793_v10 = vpop.eup %792  ;;  %v535_v19 = vmul.f32 %v531_v16, %v1014_v26  ;;  %v500_v11 = vadd.f32 1e-05, %v496_v58 }
  0x72   : > { %v520_v23 = vadd.f32 1.0, %v793_v10  ;;  %v513_v20 = vmul.f32 0.70710677, %v505_v50  ;;  %v795_v7 = vpop.eup %794  ;;  %v509_v26 = vmul.f32 0.5, %v505_v50 }
  0x73   : > { %665 = vst [vmem:[%s1221_s3 + $0x60] sm:$0xff] %v535_v19  ;;  %v506_v18 = vadd.f32 %v1096_v24, %v500_v11 }
  0x74   : > { %v524_v48 = vmul.f32 %v520_v23, %v508_v56  ;;  %796 = verf.f32 %v513_v20 }
  0x75   : > { %v514_v4 = vmul.f32 0.70710677, %v506_v18  ;;  %798 = vrcp.f32 %v499_v52  ;;  %v510_v54 = vmul.f32 0.5, %v506_v18 }
  0x76   : > { %v532_v40 = vmul.f32 %v795_v7, %v524_v48 }
  0x77   : > { %800 = verf.f32 %v514_v4 }
  0x78   : > { %v536_v55 = vmul.f32 %v532_v40, %v1051_v41  ;;  %802 = vrcp.f32 %v500_v11 }
  0x7a   : > { %666 = vst [vmem:[%s1221_s3 + $0x68] sm:$0xff] %v536_v55 }
  0x81   : > { %v797_v15 = vpop.eup %796 }
  0x82   : > { %v521_v43 = vadd.f32 1.0, %v797_v15  ;;  %v799_v59 = vpop.eup %798 }
  0x84   : > { %v801_v53 = vpop.eup %800  ;;  %v525_v31 = vmul.f32 %v521_v43, %v509_v26 }
  0x85   : > { %v522_v24 = vadd.f32 1.0, %v801_v53  ;;  %v803_v9 = vpop.eup %802 }
  0x86   : > { %v533_v3 = vmul.f32 %v799_v59, %v525_v31 }
  0x87   : > { %v526_v25 = vmul.f32 %v522_v24, %v510_v54 }
  0x88   : > { %v537_v42 = vmul.f32 %v533_v3, %v1099_v33 }
  0x89   : > { %v534_v28 = vmul.f32 %v803_v9, %v526_v25 }
  0x8a   : > { %667 = vst [vmem:[%s1221_s3 + $0x70] sm:$0xff] %v537_v42 }
  0x8b   : > { %v538_v41 = vmul.f32 %v534_v28, %v1107_v38 }
  0x8d   : > { %668 = vst [vmem:[%s1221_s3 + $0x78] sm:$0xff] %v538_v41 }
  0x8e PF: > { %s13_s11 = sadd.s32 1, %s845_s11   ;;  %s1315_s9 = smov %s841_s10 }
  0x8f   : > { %p10_p2 = scmp.ge.s32.totalorder %s13_s11, 4   ;;  %s1316_s10 = smov %s1318_s13 }
  0x91   :  { %12 = sbr.rel (!%p10_p2) target bundleno = 2 (0x2), region = 66 }
  0x96   :  { %574 = vsyncpa [#allocation3], 1 }
  0x97   :  { %576 = vsyncpa [#allocation3 + $0x1], 1 }

</bundles_post_ra>
